<compile_context>
chip_gen: v5e
topology: v5e:2x2
jax: 0.10.0
libtpu: 0.0.40
codegen_flags: <defaults>
</compile_context>

<pallas_src>
import jax
import jax.numpy as jnp
from jax.experimental import pallas as pl
from jax.experimental.pallas import tpu as pltpu


def _ffwd_kernel(x_ref, w1_ref, b1_ref, w2_ref, b2_ref, o_ref, acc_ref):
    # x_ref:  (tm, C)   bf16
    # w1_ref: (C, th)   bf16
    # b1_ref: (1, th)   f32
    # w2_ref: (th, C)   bf16
    # b2_ref: (1, C)    f32
    # o_ref:  (tm, C)   out dtype
    # acc_ref:(tm, C)   f32 scratch, persistent across the H (k) axis
    k = pl.program_id(1)

    @pl.when(k == 0)
    def _():
        acc_ref[...] = jnp.zeros_like(acc_ref)

    # First matmul chunk on the MXU, f32 accumulation: (tm, C) @ (C, th).
    h = jnp.dot(x_ref[...], w1_ref[...], preferred_element_type=jnp.float32)
    h = jnp.maximum(h + b1_ref[...], 0.0)  # bias + ReLU, exact per-H-column
    # Second matmul chunk, accumulated over the H axis: (tm, th) @ (th, C).
    acc_ref[...] += jnp.dot(h.astype(w2_ref.dtype), w2_ref[...],
                            preferred_element_type=jnp.float32)

    @pl.when(k == pl.num_programs(1) - 1)
    def _():
        # b2 added once, in the finalize branch only.
        o_ref[...] = (acc_ref[...] + b2_ref[...]).astype(o_ref.dtype)


def _pick_tile(n, cap):
    """Largest 'nice' tile <= cap that divides n; else the full extent."""
    for t in (512, 256, 128, 64, 32, 16, 8):
        if t <= cap and n % t == 0:
            return t
    return n


def _device_caps():
    """(tm_cap, th_cap, vmem_cap_bytes) per TPU generation."""
    try:
        kind = jax.devices()[0].device_kind.lower()
    except Exception:  # pragma: no cover - defensive
        kind = ""
    if "v7" in kind:          # 64 MiB VMEM -> smaller tiles, tighter cap
        return 256, 256, 56 * 2**20
    if "v5" in kind:          # 4x128^2 MXU -> 128/256 tiles saturate it
        return 256, 256, 100 * 2**20
    return 512, 512, 100 * 2**20  # v6e default: fill the 256^2 MXU


def feed_forward(x, w1, b1, w2, b2):
    """x: (B, T, C) float32.  Returns (B, T, C)."""
    B, T, C = x.shape
    M = B * T
    H = w1.shape[1]

    tm_cap, th_cap, vmem_cap = _device_caps()

    # bf16 for MXU inputs; biases / accumulation stay f32.
    compute_dtype = jnp.bfloat16
    x2d = x.reshape(M, C).astype(compute_dtype)
    w1c = w1.astype(compute_dtype)
    w2c = w2.astype(compute_dtype)
    b1_2d = b1.reshape(1, H).astype(jnp.float32)
    b2_2d = b2.reshape(1, C).astype(jnp.float32)

    # Pad M so a clean row tile exists (zero rows are computed then dropped).
    if M >= tm_cap:
        m_pad = pl.cdiv(M, tm_cap) * tm_cap
    else:
        m_pad = ((M + 7) // 8) * 8
    if m_pad != M:
        x2d = jnp.pad(x2d, ((0, m_pad - M), (0, 0)))

    tm = _pick_tile(m_pad, tm_cap)
    th = _pick_tile(H, th_cap)
    grid = (m_pad // tm, H // th)

    # Rough resident-VMEM estimate: double-buffered inputs + output + scratch.
    est = (2 * (tm * C * 2 + C * th * 2 + th * 4 + th * C * 2 + C * 4)
           + 2 * tm * C * 4
           + tm * C * 4)
    cp_kwargs = dict(dimension_semantics=("parallel", "arbitrary"))
    if est > 30 * 2**20:
        cp_kwargs["vmem_limit_bytes"] = int(min(2 * est, vmem_cap))

    out2d = pl.pallas_call(
        _ffwd_kernel,
        out_shape=jax.ShapeDtypeStruct((m_pad, C), x.dtype),
        grid_spec=pltpu.PrefetchScalarGridSpec(
            num_scalar_prefetch=0,
            grid=grid,
            in_specs=[
                pl.BlockSpec((tm, C), lambda i, k: (i, 0)),   # x rows
                pl.BlockSpec((C, th), lambda i, k: (0, k)),   # W1 column chunk
                pl.BlockSpec((1, th), lambda i, k: (0, k)),   # b1 chunk
                pl.BlockSpec((th, C), lambda i, k: (k, 0)),   # W2 row chunk
                pl.BlockSpec((1, C), lambda i, k: (0, 0)),    # b2
            ],
            out_specs=pl.BlockSpec((tm, C), lambda i, k: (i, 0)),
            scratch_shapes=[pltpu.VMEM((tm, C), jnp.float32)],
        ),
        compiler_params=pltpu.CompilerParams(**cp_kwargs),
    )(x2d, w1c, b1_2d, w2c, b2_2d)

    return out2d[:M].reshape(B, T, C)


if __name__ == "__main__":
    n_embd = 64
    hidden = 4 * n_embd
    B, T = 2, 8

    key = jax.random.PRNGKey(0)
    kx, kw1, kb1, kw2, kb2 = jax.random.split(key, 5)

    # PyTorch-style uniform(-1/sqrt(fan_in), 1/sqrt(fan_in)) init.
    bound1 = 1.0 / (n_embd ** 0.5)
    bound2 = 1.0 / (hidden ** 0.5)
    x = jax.random.normal(kx, (B, T, n_embd), dtype=jnp.float32)
    w1 = jax.random.uniform(kw1, (n_embd, hidden), jnp.float32, -bound1, bound1)
    b1 = jax.random.uniform(kb1, (hidden,), jnp.float32, -bound1, bound1)
    w2 = jax.random.uniform(kw2, (hidden, n_embd), jnp.float32, -bound2, bound2)
    b2 = jax.random.uniform(kb2, (n_embd,), jnp.float32, -bound2, bound2)

    out = feed_forward(x, w1, b1, w2, b2)
    jax.block_until_ready(out)

    # Reference mirroring the kernel's bf16 inputs with f32 accumulation.
    xb = x.reshape(-1, n_embd).astype(jnp.bfloat16)
    w1b = w1.astype(jnp.bfloat16)
    w2b = w2.astype(jnp.bfloat16)
    h_ref = jnp.maximum(
        jnp.dot(xb, w1b, preferred_element_type=jnp.float32) + b1, 0.0)
    ref_bf16 = (jnp.dot(h_ref.astype(jnp.bfloat16), w2b,
                        preferred_element_type=jnp.float32) + b2)
    ref_bf16 = ref_bf16.reshape(B, T, n_embd)
    assert jnp.allclose(out, ref_bf16, atol=2e-3, rtol=2e-3), \
        "mismatch vs bf16-compute reference"

    # Sanity check against the pure-f32 reference (loose tolerance for bf16 MXU).
    ref_f32 = (jnp.maximum(x.reshape(-1, n_embd) @ w1 + b1, 0.0) @ w2 + b2)
    ref_f32 = ref_f32.reshape(B, T, n_embd)
    assert jnp.allclose(out, ref_f32, atol=5e-2, rtol=5e-2), \
        "mismatch vs f32 reference"

    print("KERNEL_OK")
</pallas_src>

<mosaic_0001>
module attributes {stable_mosaic.version = 11 : i64} {
  func.func @_ffwd_kernel(%arg0: i32, %arg1: i32, %arg2: memref<16x64xbf16, #tpu.memory_space<vmem>>, %arg3: memref<64x256xbf16, #tpu.memory_space<vmem>>, %arg4: memref<1x256xf32, #tpu.memory_space<vmem>>, %arg5: memref<256x64xbf16, #tpu.memory_space<vmem>>, %arg6: memref<1x64xf32, #tpu.memory_space<vmem>>, %arg7: memref<16x64xf32, #tpu.memory_space<vmem>>, %arg8: memref<16x64xf32, #tpu.memory_space<vmem>>) attributes {dimension_semantics = [#tpu.dimension_semantics<parallel>, #tpu.dimension_semantics<arbitrary>], iteration_bounds = array<i64: 1, 1>, scalar_prefetch = 0 : i64, scratch_operands = 1 : i64, tpu.core_type = #tpu.core_type<tc>, window_params = [{transform_indices = @transform_0, window_bounds = array<i64: 16, 64>}, {transform_indices = @transform_1, window_bounds = array<i64: 64, 256>}, {transform_indices = @transform_2, window_bounds = array<i64: 1, 256>}, {transform_indices = @transform_3, window_bounds = array<i64: 256, 64>}, {pipeline_mode = #tpu.pipeline_mode<synchronous>, transform_indices = @transform_4, window_bounds = array<i64: 1, 64>}, {transform_indices = @transform_5, window_bounds = array<i64: 16, 64>}]} {
    %c0_i32 = arith.constant 0 : i32
    %0 = arith.cmpi eq, %arg1, %c0_i32 : i32
    %1 = arith.extui %0 : i1 to i32
    %c0_i32_0 = arith.constant 0 : i32
    %2 = arith.cmpi ne, %1, %c0_i32_0 : i32
    scf.if %2 {
      %cst_16 = arith.constant 0.000000e+00 : f32
      %20 = vector.broadcast %cst_16 : f32 to vector<16x64xf32>
      %c0_17 = arith.constant 0 : index
      %c0_18 = arith.constant 0 : index
      %21 = vector.load %arg8[%c0_17, %c0_18] : memref<16x64xf32, #tpu.memory_space<vmem>>, vector<16x64xf32>
      tpu.vector_store %arg8[%c0_17, %c0_18], %20 {strides = array<i32>} : memref<16x64xf32, #tpu.memory_space<vmem>>, vector<16x64xf32>,
    } else {
    }
    %c0 = arith.constant 0 : index
    %c0_1 = arith.constant 0 : index
    %3 = vector.load %arg2[%c0, %c0_1] : memref<16x64xbf16, #tpu.memory_space<vmem>>, vector<16x64xbf16>
    %c0_2 = arith.constant 0 : index
    %c0_3 = arith.constant 0 : index
    %4 = vector.load %arg3[%c0_2, %c0_3] : memref<64x256xbf16, #tpu.memory_space<vmem>>, vector<64x256xbf16>
    %cst = arith.constant dense<0.000000e+00> : vector<16x256xf32>
    %5 = tpu.matmul %3, %4, %cst {dimension_numbers = #tpu.dot_dimension_numbers<[1], [0], [0], [1], [0, 0, 1, 1], [], []>} : vector<16x64xbf16>, vector<64x256xbf16>, vector<16x256xf32> -> vector<16x256xf32>
    %c0_4 = arith.constant 0 : index
    %c0_5 = arith.constant 0 : index
    %6 = vector.load %arg4[%c0_4, %c0_5] : memref<1x256xf32, #tpu.memory_space<vmem>>, vector<1x256xf32>
    %7 = vector.broadcast %6 : vector<1x256xf32> to vector<16x256xf32>
    %8 = arith.addf %5, %7 : vector<16x256xf32>
    %cst_6 = arith.constant 0.000000e+00 : f32
    %9 = vector.broadcast %cst_6 : f32 to vector<16x256xf32>
    %10 = arith.maximumf %8, %9 : vector<16x256xf32>
    %c0_7 = arith.constant 0 : index
    %c0_8 = arith.constant 0 : index
    %11 = vector.load %arg8[%c0_7, %c0_8] : memref<16x64xf32, #tpu.memory_space<vmem>>, vector<16x64xf32>
    %12 = arith.truncf %10 : vector<16x256xf32> to vector<16x256xbf16>
    %c0_9 = arith.constant 0 : index
    %c0_10 = arith.constant 0 : index
    %13 = vector.load %arg5[%c0_9, %c0_10] : memref<256x64xbf16, #tpu.memory_space<vmem>>, vector<256x64xbf16>
    %cst_11 = arith.constant dense<0.000000e+00> : vector<16x64xf32>
    %14 = tpu.matmul %12, %13, %cst_11 {dimension_numbers = #tpu.dot_dimension_numbers<[1], [0], [0], [1], [0, 0, 1, 1], [], []>} : vector<16x256xbf16>, vector<256x64xbf16>, vector<16x64xf32> -> vector<16x64xf32>
    %15 = arith.addf %11, %14 : vector<16x64xf32>
    %c0_12 = arith.constant 0 : index
    %c0_13 = arith.constant 0 : index
    %16 = vector.load %arg8[%c0_12, %c0_13] : memref<16x64xf32, #tpu.memory_space<vmem>>, vector<16x64xf32>
    tpu.vector_store %arg8[%c0_12, %c0_13], %15 {strides = array<i32>} : memref<16x64xf32, #tpu.memory_space<vmem>>, vector<16x64xf32>,
    %c0_i32_14 = arith.constant 0 : i32
    %17 = arith.cmpi eq, %arg1, %c0_i32_14 : i32
    %18 = arith.extui %17 : i1 to i32
    %c0_i32_15 = arith.constant 0 : i32
    %19 = arith.cmpi ne, %18, %c0_i32_15 : i32
    scf.if %19 {
      %c0_16 = arith.constant 0 : index
      %c0_17 = arith.constant 0 : index
      %20 = vector.load %arg8[%c0_16, %c0_17] : memref<16x64xf32, #tpu.memory_space<vmem>>, vector<16x64xf32>
      %c0_18 = arith.constant 0 : index
      %c0_19 = arith.constant 0 : index
      %21 = vector.load %arg6[%c0_18, %c0_19] : memref<1x64xf32, #tpu.memory_space<vmem>>, vector<1x64xf32>
      %22 = vector.broadcast %21 : vector<1x64xf32> to vector<16x64xf32>
      %23 = arith.addf %20, %22 : vector<16x64xf32>
      %c0_20 = arith.constant 0 : index
      %c0_21 = arith.constant 0 : index
      %24 = vector.load %arg7[%c0_20, %c0_21] : memref<16x64xf32, #tpu.memory_space<vmem>>, vector<16x64xf32>
      tpu.vector_store %arg7[%c0_20, %c0_21], %23 {strides = array<i32>} : memref<16x64xf32, #tpu.memory_space<vmem>>, vector<16x64xf32>,
    } else {
    }
    return
  }
  func.func @transform_0(%arg0: i32, %arg1: i32) -> (i32, i32) {
    %c0_i32 = arith.constant 0 : i32
    %c0_i32_0 = arith.constant 0 : i32
    return %arg0, %c0_i32 : i32, i32
  }
  func.func @transform_1(%arg0: i32, %arg1: i32) -> (i32, i32) {
    %c0_i32 = arith.constant 0 : i32
    %c0_i32_0 = arith.constant 0 : i32
    return %c0_i32, %arg1 : i32, i32
  }
  func.func @transform_2(%arg0: i32, %arg1: i32) -> (i32, i32) {
    %c0_i32 = arith.constant 0 : i32
    %c0_i32_0 = arith.constant 0 : i32
    return %c0_i32, %arg1 : i32, i32
  }
  func.func @transform_3(%arg0: i32, %arg1: i32) -> (i32, i32) {
    %c0_i32 = arith.constant 0 : i32
    %c0_i32_0 = arith.constant 0 : i32
    return %arg1, %c0_i32 : i32, i32
  }
  func.func @transform_4(%arg0: i32, %arg1: i32) -> (i32, i32) {
    %c0_i32 = arith.constant 0 : i32
    %c0_i32_0 = arith.constant 0 : i32
    %c0_i32_1 = arith.constant 0 : i32
    return %c0_i32, %c0_i32_0 : i32, i32
  }
  func.func @transform_5(%arg0: i32, %arg1: i32) -> (i32, i32) {
    %c0_i32 = arith.constant 0 : i32
    %c0_i32_0 = arith.constant 0 : i32
    return %arg0, %c0_i32 : i32, i32
  }
}

</mosaic_0001>

<bundles_post_ra>
// kernel: tpu_custom_call.1
= control target key start
LH: loop header
LB: loop body
LE: loop exit
PB: predicated region body
PF: predicated region fallthrough
CT: control target
= control target key end

     0   :  { %s629_s0 = inlined_call_operand.vmem [shape: bf16[16,64], index: 0, kind: input, shape index: {}]   ;;  %s630_s1 = inlined_call_operand.vmem [shape: bf16[64,256], index: 1, kind: input, shape index: {}]   ;;  %s631_s2 = inlined_call_operand.vmem [shape: f32[1,256], index: 2, kind: input, shape index: {}]   ;;  %s632_s3 = inlined_call_operand.vmem [shape: bf16[256,64], index: 3, kind: input, shape index: {}]   ;;  %s633_s4 = inlined_call_operand.vmem [shape: f32[1,64], index: 4, kind: input, shape index: {}]   ;;  %s634_s5 = inlined_call_operand.hbm [shape: f32[16,64], index: 5, kind: output, shape index: {}]  }
   0x1   :  { %v351_v0 = vld [vmem:[%s630_s1 + $0x30] sm:$0xf]  ;;  %v431_v1 = vld [vmem:[%s630_s1 + $0x34] sm:$0xf0]  ;;  %v430_v2 = vld [vmem:[%s630_s1 + $0x34] sm:$0xf] }
   0x2   :  { %v352_v3 = vor.u32 %v431_v1, %v351_v0  ;;  %v353_v4 = vld [vmem:[%s630_s1 + $0x38] sm:$0xf0]  ;;  %v343_v5 = vld [vmem:[%s630_s1 + $0x20] sm:$0xf]  ;;  %v429_v6 = vld [vmem:[%s630_s1 + $0x24] sm:$0xf0] }
   0x3   :  { %v356_v7 = vor.u32 %v430_v2, %v353_v4  ;;  %v428_v8 = vld [vmem:[%s630_s1 + $0x24] sm:$0xf]  ;;  %v345_v9 = vld [vmem:[%s630_s1 + $0x28] sm:$0xf0]  ;;  %v344_v10 = vor.u32 %v429_v6, %v343_v5  ;;  %v335_v12 = vld [vmem:[%s630_s1 + $0x10] sm:$0xf] }
   0x4   :  { %98 = vmatpush.bf16.msra.mxu0 %v352_v3  ;;  %v348_v11 = vor.u32 %v428_v8, %v345_v9  ;;  %v427_v13 = vld [vmem:[%s630_s1 + $0x14] sm:$0xf0]  ;;  %v426_v14 = vld [vmem:[%s630_s1 + $0x14] sm:$0xf]  ;;  %v337_v15 = vld [vmem:[%s630_s1 + $0x18] sm:$0xf0] }
   0x5   :  { %112 = vmatpush.bf16.msra.mxu1 %v356_v7  ;;  %v439_v16 = vld [vmem:[%s632_s3 + $0x38] sm:$0xff]  ;;  %v336_v18 = vor.u32 %v427_v13, %v335_v12  ;;  %v327_v19 = vld [vmem:[%s630_s1] sm:$0xf]  ;;  %v438_v20 = vld [vmem:[%s632_s3 + $0x30] sm:$0xff]  ;;  %v340_v21 = vor.u32 %v426_v14, %v337_v15 }
   0x6   :  { %v447_v17 = vld [vmem:[%s632_s3 + $0x78] sm:$0xff]  ;;  %258 = vmatpush.bf16.msra.mxu2 %v439_v16  ;;  %v425_v22 = vld [vmem:[%s630_s1 + $0x4] sm:$0xf0]  ;;  %v446_v23 = vld [vmem:[%s632_s3 + $0x70] sm:$0xff] }
   0x7   :  { %272 = vmatpush.bf16.msra.mxu3 %v447_v17 }
   0x8   :  { %99 = vmatpush.bf16.msra.mxu0 %v344_v10 }
   0x9   :  { %113 = vmatpush.bf16.msra.mxu1 %v348_v11 }
   0xa   :  { %10 = vsyncpa [#allocation4], 0  ;;  %v424_v24 = vld [vmem:[%s630_s1 + $0x4] sm:$0xf]  ;;  %v329_v25 = vld [vmem:[%s630_s1 + $0x8] sm:$0xf0]  ;;  %v328_v26 = vor.u32 %v425_v22, %v327_v19  ;;  %259 = vmatpush.bf16.msra.mxu2 %v438_v20 }
   0xb   :  { %v437_v27 = vld [vmem:[%s632_s3 + $0x28] sm:$0xff]  ;;  %v332_v28 = vor.u32 %v424_v24, %v329_v25  ;;  %273 = vmatpush.bf16.msra.mxu3 %v446_v23  ;;  %v423_v30 = vld [vmem:[%s629_s0] sm:$0xff]  ;;  %vm26_vm0 = vcmask 523264   ;;  %v435_v33 = vld [vmem:[%s632_s3 + $0x18] sm:$0xff]  ;;  %v479_v58 = vmov 0.0   ;;  %s480_s9 = smov [#allocation3]  }
   0xc   :  { %100 = vmatpush.bf16.msra.mxu0 %v336_v18  ;;  %v445_v29 = vld [vmem:[%s632_s3 + $0x68] sm:$0xff]  ;;  %v436_v31 = vld [vmem:[%s632_s3 + $0x20] sm:$0xff]  ;;  %v443_v34 = vld [vmem:[%s632_s3 + $0x58] sm:$0xff]  ;;  %27 = vst.msk [vmem:[#allocation2] sm:$0xff] %vm26_vm0, %v479_v58  ;;  %s307_s10 = sshll.u32 %s480_s9, 4  ;;  %s309_s13 = sshll.u32 %s634_s5, 4  ;;  %s308_s10 = int_to_ptr.vmem [resolvable:$true] %s307_s10  ;;  %s310_s13 = int_to_ptr.hbm [resolvable:$true] %s309_s13 }
   0xd   :  { %114 = vmatpush.bf16.msra.mxu1 %v340_v21  ;;  %v444_v32 = vld [vmem:[%s632_s3 + $0x60] sm:$0xff]  ;;  %v434_v35 = vld [vmem:[%s632_s3 + $0x10] sm:$0xff]  ;;  %v433_v37 = vld [vmem:[%s632_s3 + $0x8] sm:$0xff]  ;;  %28 = vst.msk [vmem:[#allocation2 + $0x8] sm:$0xff] %vm26_vm0, %v479_v58  ;;  %s482_s1 = smov 8  }
   0xe   :  { %260 = vmatpush.bf16.msra.mxu2 %v437_v27  ;;  %v442_v36 = vld [vmem:[%s632_s3 + $0x50] sm:$0xff]  ;;  %v441_v38 = vld [vmem:[%s632_s3 + $0x48] sm:$0xff]  ;;  %v432_v39 = vld [vmem:[%s632_s3] sm:$0xff] }
   0xf   :  { %274 = vmatpush.bf16.msra.mxu3 %v445_v29  ;;  %v440_v40 = vld [vmem:[%s632_s3 + $0x40] sm:$0xff] }
  0x10   :  { %101 = vmatpush.bf16.msra.mxu0 %v328_v26  ;;  %v39_v41 = vld [vmem:[%s631_s2] sm:$0x3] }
  0x11   :  { %115 = vmatpush.bf16.msra.mxu1 %v332_v28  ;;  %v41_v44 = vperm.slane %v39_v41, 0  ;;  %v42_v45 = vperm.slane %v39_v41, 1  ;;  %v452_v4 = vld [vmem:[%s633_s4] ss:$0 sm:$0xff]  ;;  %s481_s4 = smov 128  }
  0x12   :  { %261 = vmatpush.bf16.msra.mxu2 %v436_v31 }
  0x13   :  { %357 = vmatmul.msk.bf16.vlgmr.msra.gmra.mxu0 %vm26_vm0, %v423_v30  ;;  %275 = vmatpush.bf16.msra.mxu3 %v444_v32  ;;  %v126_v60 = vld [vmem:[#allocation2] sm:$0xff] }
  0x14   :  { %358 = vmatmul.msk.bf16.vlgmr.msra.gmra.mxu1 %vm26_vm0, %v423_v30  ;;  %v127_v1 = vld [vmem:[#allocation2 + $0x8] sm:$0xff] }
  0x16   :  { %262 = vmatpush.bf16.msra.mxu2 %v435_v33 }
  0x17   :  { %276 = vmatpush.bf16.msra.mxu3 %v443_v34 }
  0x1a   :  { %263 = vmatpush.bf16.msra.mxu2 %v434_v35 }
  0x1b   :  { %277 = vmatpush.bf16.msra.mxu3 %v442_v36 }
  0x1e   :  { %264 = vmatpush.bf16.msra.mxu2 %v433_v37 }
  0x1f   :  { %278 = vmatpush.bf16.msra.mxu3 %v441_v38 }
  0x22   :  { %265 = vmatpush.bf16.msra.mxu2 %v432_v39 }
  0x23   :  { %279 = vmatpush.bf16.msra.mxu3 %v440_v40 }
  0x90   :  { %v103_v42 = vpop.f32.mrf.mxu0 }
  0x91   :  { %v117_v43 = vpop.f32.mrf.mxu1  ;;  %v104_v46 = vadd.f32 %v103_v42, %v41_v44 }
  0x92   :  { %v118_v47 = vadd.f32 %v117_v43, %v42_v45 }
  0x93   :  { %v122_v52 = vmax.f32 %v104_v46, 0.0 }
  0x94   :  { %v123_v54 = vmax.f32 %v118_v47, 0.0 }
  0x98   :  { %v105_v48 = vpop.f32.mrf.mxu0 }
  0x99   :  { %v106_v49 = vadd.f32 %v105_v48, %v41_v44  ;;  %v119_v50 = vpop.f32.mrf.mxu1 }
  0x9a   :  { %v120_v51 = vadd.f32 %v119_v50, %v42_v45 }
  0x9b   :  { %v124_v53 = vmax.f32 %v106_v49, 0.0 }
  0x9c   :  { %v125_v55 = vmax.f32 %v120_v51, 0.0 }
  0x9d   :  { %v128_v56 = vpack.c.bf16 %v124_v53, %v122_v52 }
  0x9e   :  { %v129_v57 = vpack.c.bf16 %v125_v55, %v123_v54 }
  0x9f   :  { %266 = vmatmul.bf16.vlgmr.msra.gmra.mxu2 %v128_v56 }
  0xa0   :  { %280 = vmatmul.bf16.vlgmr.msra.gmra.mxu3 %v129_v57 }
 0x122   :  { %v267_v59 = vpop.f32.mrf.mxu2 }
 0x123   :  { %v281_v61 = vpop.f32.mrf.mxu3 }
 0x124   :  { %v282_v62 = vadd.f32 %v281_v61, %v267_v59 }
 0x126   :  { %v286_v63 = vadd.f32 %v282_v62, %v126_v60 }
 0x128   :  { %288 = vst.msk [vmem:[#allocation2] sm:$0xff] %vm26_vm0, %v286_v63 }
 0x12a   :  { %v269_v0 = vpop.f32.mrf.mxu2 }
 0x12b   :  { %v283_v2 = vpop.f32.mrf.mxu3 }
 0x12c   :  { %v284_v3 = vadd.f32 %v283_v2, %v269_v0 }
 0x12e   :  { %v287_v5 = vadd.f32 %v284_v3, %v127_v1 }
 0x12f   :  { %v293_v6 = vld [vmem:[#allocation2] sm:$0xff] }
 0x130   :  { %289 = vst.msk [vmem:[#allocation2 + $0x8] sm:$0xff] %vm26_vm0, %v287_v5  ;;  %v299_v7 = vadd.f32 %v452_v4, %v293_v6 }
 0x132   :  { %301 = vst.msk [vmem:[#allocation3] sm:$0xff] %vm26_vm0, %v299_v7 }
 0x137   :  { %v294_v8 = vld [vmem:[#allocation2 + $0x8] sm:$0xff] }
 0x138   :  { %v300_v9 = vadd.f32 %v452_v4, %v294_v8 }
 0x13a   :  { %302 = vst.msk [vmem:[#allocation3 + $0x8] sm:$0xff] %vm26_vm0, %v300_v9 }
 0x13b   :  { %315 = dma.vmem_to_hbm [thread:$0]  %s308_s10, 256, %s310_s13, [#allocation4], %s481_s4, %s481_s4, %s482_s1  }
 0x13c   :  { %477 = dma.done.wait [#allocation4], 256  }
 0x13d   :  { %478 = vsyncadd [#allocation4], 4294967040 }
 0x13e   :  { %320 = vsyncpa [#allocation4], 1 }

</bundles_post_ra>
